<compile_context>
chip_gen: v7x
topology: tpu7x:2x2x1
jax: 0.10.0
libtpu: 0.0.40
codegen_flags: <defaults>
</compile_context>

<pallas_src>
import jax
import jax.numpy as jnp
from jax.experimental import pallas as pl
from jax.experimental.pallas import tpu as pltpu


def _make_flash_kernel(*, s2, acc_in_out, mask_k, out_dtype, mm_precision):
    """Online-softmax attention over one (batch, q-tile); ki = k-tile axis."""

    def kernel(q_ref, k_ref, o_ref, *scratch):
        if acc_in_out:
            m_sc, l_sc = scratch
        else:
            m_sc, l_sc, acc_sc = scratch

        ki = pl.program_id(2)
        last_k = pl.num_programs(2) - 1

        q = q_ref[0]       # (tq, D) compute dtype
        kv = k_ref[0]      # (tk, D) compute dtype
        tk = kv.shape[0]

        if mask_k:
            # Ragged final k tile: zero the padded rows (keeps garbage/NaN out
            # of the MXU) and mask their scores to -inf below.
            k_row = jax.lax.broadcasted_iota(jnp.int32, (tk, 1), 0) + ki * tk
            kv = jnp.where(k_row < s2, kv, jnp.zeros_like(kv))

        # qk = x1 @ x2^T : NT contraction on the MXU, no materialized transpose.
        s = jax.lax.dot_general(q, kv, (((1,), (1,)), ((), ())),
                                precision=mm_precision,
                                preferred_element_type=jnp.float32)
        # scale_factor == sys.maxsize in the reference module -> no scaling.

        if mask_k:
            col = jax.lax.broadcasted_iota(jnp.int32, s.shape, 1) + ki * tk
            s = jnp.where(col < s2, s, -jnp.inf)

        m_cur = jnp.max(s, axis=-1, keepdims=True)

        def pv(p):
            return jax.lax.dot_general(p.astype(kv.dtype), kv,
                                       (((1,), (0,)), ((), ())),
                                       precision=mm_precision,
                                       preferred_element_type=jnp.float32)

        def read_acc():
            return o_ref[0] if acc_in_out else acc_sc[...]

        def write_acc(v):
            if acc_in_out:
                o_ref[0] = v
            else:
                acc_sc[...] = v

        @pl.when(ki == 0)
        def _():
            # First k tile: plain init (skip the rescale of a zero accumulator).
            p = jnp.exp(s - m_cur)
            m_sc[...] = m_cur
            l_sc[...] = jnp.sum(p, axis=-1, keepdims=True)
            write_acc(pv(p))

        @pl.when(ki != 0)
        def _():
            m_prev = m_sc[...]
            m_new = jnp.maximum(m_prev, m_cur)
            alpha = jnp.exp(m_prev - m_new)
            p = jnp.exp(s - m_new)
            l_sc[...] = alpha * l_sc[...] + jnp.sum(p, axis=-1, keepdims=True)
            write_acc(alpha * read_acc() + pv(p))
            m_sc[...] = m_new

        # TODO(synk): Dropout(p=0.2) is identity under eval semantics; a
        # training-mode variant would mask p via pltpu.prng_seed /
        # pltpu.prng_random_bits and rescale by 1/(1-p).

        @pl.when(ki == last_k)
        def _():
            # Exact normalization (runs once per q tile -> essentially free).
            o_ref[0] = (read_acc() / l_sc[...]).astype(out_dtype)

    return kernel


def _pick_tile(extent, cap, align):
    """Largest tile <= cap: full extent, else a lane/MXU-friendly divisor
    (multiple of 128, then of `align`), else an aligned non-dividing tile
    (the kernel masks the ragged final k block; ragged q rows are clipped)."""
    if extent <= cap:
        return extent
    for step in (128, align):
        if step > cap or step < align:
            continue
        t = (cap // step) * step
        while t >= step:
            if extent % t == 0:
                return t
            t -= step
    return max(align, (cap // align) * align)


def attention_like(x1, x2, *, compute_dtype=jnp.bfloat16,
                   q_tile_cap=256, k_tile_cap=1024,
                   vmem_budget_bytes=8 * 1024 * 1024):
    """x1: (B, S1, D), x2: (B, S2, D) -> softmax(x1 @ x2^T) @ x2, (B, S1, D)."""
    B, S1, D = x1.shape
    B2, S2, D2 = x2.shape
    assert B2 == B and D2 == D

    out_dtype = x1.dtype  # result dtype matches the module's input dtype
    if compute_dtype is not None and x1.dtype != compute_dtype:
        x1c = x1.astype(compute_dtype)
        x2c = x2.astype(compute_dtype)
    else:
        x1c, x2c = x1, x2
    cdt = x1c.dtype

    cb = jnp.dtype(cdt).itemsize
    ob = jnp.dtype(out_dtype).itemsize
    align = 16 if cb == 2 else 8           # bf16 sublane packing needs 16
    acc_in_out = (out_dtype == jnp.float32)
    mm_precision = (jax.lax.Precision.HIGHEST if cdt == jnp.float32
                    else jax.lax.Precision.DEFAULT)

    # VMEM-budget-aware tile caps (double-buffered in/out blocks + scratch);
    # comfortable under v5e's 16 MiB scoped default and v7x's 64 MiB physical.
    q_row = D * (2 * cb + 2 * ob + (0 if acc_in_out else 4))
    k_row = D * 2 * cb
    tq_cap = min(q_tile_cap,
                 max(align, ((2 * vmem_budget_bytes // 5) // q_row) // align * align))
    tk_cap = min(k_tile_cap,
                 max(align, ((3 * vmem_budget_bytes // 5) // k_row) // align * align))

    tq = _pick_tile(S1, tq_cap, align)
    tk = _pick_tile(S2, tk_cap, align)
    n_q = pl.cdiv(S1, tq)
    n_k = pl.cdiv(S2, tk)
    mask_k = (S2 % tk) != 0

    kernel = _make_flash_kernel(s2=S2, acc_in_out=acc_in_out, mask_k=mask_k,
                                out_dtype=out_dtype, mm_precision=mm_precision)

    scratch = [pltpu.VMEM((tq, 1), jnp.float32),   # running max m
               pltpu.VMEM((tq, 1), jnp.float32)]   # running denom l
    if not acc_in_out:
        scratch.append(pltpu.VMEM((tq, D), jnp.float32))  # f32 accumulator

    return pl.pallas_call(
        kernel,
        out_shape=jax.ShapeDtypeStruct((B, S1, D), out_dtype),
        grid_spec=pltpu.PrefetchScalarGridSpec(
            num_scalar_prefetch=0,
            grid=(B, n_q, n_k),
            in_specs=[
                # x1: one (q-tile, D) slab per (batch, q-tile).
                pl.BlockSpec((1, tq, D), lambda b, qi, ki: (b, qi, 0)),
                # x2: k tiles; when tk == S2 the block index is constant across
                # qi/ki so x2 is DMA'd from HBM only once per batch (resident).
                # (If a trace showed exposed k-stream DMA on v7x, this spec is
                #  where pipeline_mode=pl.Buffered(3) would go.)
                pl.BlockSpec((1, tk, D), lambda b, qi, ki: (b, ki, 0)),
            ],
            out_specs=pl.BlockSpec((1, tq, D), lambda b, qi, ki: (b, qi, 0)),
            scratch_shapes=scratch,
        ),
        compiler_params=pltpu.CompilerParams(
            dimension_semantics=("parallel", "parallel", "arbitrary")),
    )(x1c, x2c)


def _reference(x1, x2):
    hp = jax.lax.Precision.HIGHEST
    qk = jnp.einsum("bqd,bkd->bqk", x1, x2, precision=hp)
    p = jax.nn.softmax(qk, axis=-1)
    return jnp.einsum("bqk,bkd->bqd", p, x2, precision=hp)


if __name__ == "__main__":
    key = jax.random.PRNGKey(0)
    k1, k2, k3, k4 = jax.random.split(key, 4)

    # Small shapes consistent with the module's batched-attention forward.
    B, S1, S2, D = 2, 8, 16, 32
    x1 = jax.random.normal(k1, (B, S1, D), dtype=jnp.float32)
    x2 = jax.random.normal(k2, (B, S2, D), dtype=jnp.float32)
    ref = _reference(x1, x2)

    # 1) Parity path: f32 matmuls (HIGHEST precision), exact normalization.
    out = jax.block_until_ready(attention_like(x1, x2, compute_dtype=jnp.float32))
    assert out.shape == (B, S1, D) and out.dtype == jnp.float32
    assert jnp.allclose(out, ref, atol=1e-4, rtol=1e-4), "f32 path mismatch"

    # 2) Default perf path: bf16 matmul inputs, f32 softmax/accumulators,
    #    f32 output.  Compare against the reference on bf16-quantized inputs
    #    so the check isolates kernel error from input quantization.
    out_bf = jax.block_until_ready(attention_like(x1, x2))
    ref_bf = _reference(x1.astype(jnp.bfloat16).astype(jnp.float32),
                        x2.astype(jnp.bfloat16).astype(jnp.float32))
    assert out_bf.dtype == jnp.float32
    assert jnp.allclose(out_bf, ref_bf, atol=5e-2, rtol=5e-2), "bf16 path mismatch"

    # 3) Tiled path: multiple q tiles and k tiles, ragged (masked) final k tile.
    Bt, S1t, S2t, Dt = 2, 24, 36, 32
    x1t = jax.random.normal(k3, (Bt, S1t, Dt), dtype=jnp.float32)
    x2t = jax.random.normal(k4, (Bt, S2t, Dt), dtype=jnp.float32)
    out_t = jax.block_until_ready(
        attention_like(x1t, x2t, compute_dtype=jnp.float32,
                       q_tile_cap=16, k_tile_cap=16))
    ref_t = _reference(x1t, x2t)
    assert jnp.allclose(out_t, ref_t, atol=1e-4, rtol=1e-4), "tiled path mismatch"

    # 4) bf16 in / bf16 out (exercises the f32 scratch-accumulator path).
    out_b16 = jax.block_until_ready(
        attention_like(x1.astype(jnp.bfloat16), x2.astype(jnp.bfloat16)))
    assert out_b16.dtype == jnp.bfloat16
    assert jnp.allclose(out_b16.astype(jnp.float32), ref_bf,
                        atol=5e-2, rtol=5e-2), "bf16-out path mismatch"

    print("KERNEL_OK")
</pallas_src>

<mosaic_0001>
module attributes {stable_mosaic.version = 11 : i64} {
  func.func @kernel(%arg0: i32, %arg1: i32, %arg2: i32, %arg3: memref<1x8x32xf32, #tpu.memory_space<vmem>>, %arg4: memref<1x16x32xf32, #tpu.memory_space<vmem>>, %arg5: memref<1x8x32xf32, #tpu.memory_space<vmem>>, %arg6: memref<8x1xf32, #tpu.memory_space<vmem>>, %arg7: memref<8x1xf32, #tpu.memory_space<vmem>>) attributes {dimension_semantics = [#tpu.dimension_semantics<parallel>, #tpu.dimension_semantics<parallel>, #tpu.dimension_semantics<arbitrary>], iteration_bounds = array<i64: 2, 1, 1>, scalar_prefetch = 0 : i64, scratch_operands = 2 : i64, tpu.core_type = #tpu.core_type<tc>, window_params = [{transform_indices = @transform_0, window_bounds = array<i64: 1, 8, 32>}, {transform_indices = @transform_1, window_bounds = array<i64: 1, 16, 32>}, {transform_indices = @transform_2, window_bounds = array<i64: 1, 8, 32>}]} {
    %c0 = arith.constant 0 : index
    %c0_0 = arith.constant 0 : index
    %c0_1 = arith.constant 0 : index
    %0 = vector.load %arg3[%c0, %c0_0, %c0_1] : memref<1x8x32xf32, #tpu.memory_space<vmem>>, vector<1x8x32xf32>
    %1 = vector.shape_cast %0 : vector<1x8x32xf32> to vector<8x32xf32>
    %c0_2 = arith.constant 0 : index
    %c0_3 = arith.constant 0 : index
    %c0_4 = arith.constant 0 : index
    %2 = vector.load %arg4[%c0_2, %c0_3, %c0_4] : memref<1x16x32xf32, #tpu.memory_space<vmem>>, vector<1x16x32xf32>
    %3 = vector.shape_cast %2 : vector<1x16x32xf32> to vector<16x32xf32>
    %cst = arith.constant dense<0.000000e+00> : vector<8x16xf32>
    %4 = tpu.matmul %1, %3, %cst {dimension_numbers = #tpu.dot_dimension_numbers<[1], [1], [0], [0], [0, 0, 1, 0], [], []>, precision = #tpu.contract_precision<fp32>} : vector<8x32xf32>, vector<16x32xf32>, vector<8x16xf32> -> vector<8x16xf32>
    %cst_5 = arith.constant dense<0xFF800000> : vector<8xf32>
    %5 = vector.multi_reduction <maximumf>, %4, %cst_5 [1] : vector<8x16xf32> to vector<8xf32>
    %6 = vector.shape_cast %5 : vector<8xf32> to vector<8x1xf32>
    %c0_i32 = arith.constant 0 : i32
    %7 = arith.cmpi eq, %arg2, %c0_i32 : i32
    %8 = arith.extui %7 : i1 to i32
    %c0_i32_6 = arith.constant 0 : i32
    %9 = arith.cmpi ne, %8, %c0_i32_6 : i32
    scf.if %9 {
      %16 = vector.broadcast %6 : vector<8x1xf32> to vector<8x16xf32>
      %17 = arith.subf %4, %16 : vector<8x16xf32>
      %18 = math.exp %17 : vector<8x16xf32>
      %c0_11 = arith.constant 0 : index
      %c0_12 = arith.constant 0 : index
      %19 = vector.load %arg6[%c0_11, %c0_12] : memref<8x1xf32, #tpu.memory_space<vmem>>, vector<8x1xf32>
      tpu.vector_store %arg6[%c0_11, %c0_12], %6 {strides = array<i32>} : memref<8x1xf32, #tpu.memory_space<vmem>>, vector<8x1xf32>,
      %cst_13 = arith.constant dense<0.000000e+00> : vector<8xf32>
      %20 = vector.multi_reduction <add>, %18, %cst_13 [1] : vector<8x16xf32> to vector<8xf32>
      %21 = vector.shape_cast %20 : vector<8xf32> to vector<8x1xf32>
      %c0_14 = arith.constant 0 : index
      %c0_15 = arith.constant 0 : index
      %22 = vector.load %arg7[%c0_14, %c0_15] : memref<8x1xf32, #tpu.memory_space<vmem>>, vector<8x1xf32>
      tpu.vector_store %arg7[%c0_14, %c0_15], %21 {strides = array<i32>} : memref<8x1xf32, #tpu.memory_space<vmem>>, vector<8x1xf32>,
      %cst_16 = arith.constant dense<0.000000e+00> : vector<8x32xf32>
      %23 = tpu.matmul %18, %3, %cst_16 {dimension_numbers = #tpu.dot_dimension_numbers<[1], [0], [0], [1], [0, 0, 1, 1], [], []>, precision = #tpu.contract_precision<fp32>} : vector<8x16xf32>, vector<16x32xf32>, vector<8x32xf32> -> vector<8x32xf32>
      %c0_17 = arith.constant 0 : index
      %c0_18 = arith.constant 0 : index
      %c0_19 = arith.constant 0 : index
      %24 = vector.load %arg5[%c0_17, %c0_18, %c0_19] : memref<1x8x32xf32, #tpu.memory_space<vmem>>, vector<1x8x32xf32>
      %25 = vector.shape_cast %24 : vector<1x8x32xf32> to vector<8x32xf32>
      %26 = vector.shape_cast %23 : vector<8x32xf32> to vector<1x8x32xf32>
      tpu.vector_store %arg5[%c0_17, %c0_18, %c0_19], %26 {strides = array<i32>} : memref<1x8x32xf32, #tpu.memory_space<vmem>>, vector<1x8x32xf32>,
    } else {
    }
    %c0_i32_7 = arith.constant 0 : i32
    %10 = arith.cmpi ne, %arg2, %c0_i32_7 : i32
    %11 = arith.extui %10 : i1 to i32
    %c0_i32_8 = arith.constant 0 : i32
    %12 = arith.cmpi ne, %11, %c0_i32_8 : i32
    scf.if %12 {
      %c0_11 = arith.constant 0 : index
      %c0_12 = arith.constant 0 : index
      %16 = vector.load %arg6[%c0_11, %c0_12] : memref<8x1xf32, #tpu.memory_space<vmem>>, vector<8x1xf32>
      %17 = arith.maximumf %16, %6 : vector<8x1xf32>
      %18 = arith.subf %16, %17 : vector<8x1xf32>
      %19 = math.exp %18 : vector<8x1xf32>
      %20 = vector.broadcast %17 : vector<8x1xf32> to vector<8x16xf32>
      %21 = arith.subf %4, %20 : vector<8x16xf32>
      %22 = math.exp %21 : vector<8x16xf32>
      %c0_13 = arith.constant 0 : index
      %c0_14 = arith.constant 0 : index
      %23 = vector.load %arg7[%c0_13, %c0_14] : memref<8x1xf32, #tpu.memory_space<vmem>>, vector<8x1xf32>
      %24 = arith.mulf %19, %23 : vector<8x1xf32>
      %cst_15 = arith.constant dense<0.000000e+00> : vector<8xf32>
      %25 = vector.multi_reduction <add>, %22, %cst_15 [1] : vector<8x16xf32> to vector<8xf32>
      %26 = vector.shape_cast %25 : vector<8xf32> to vector<8x1xf32>
      %27 = arith.addf %24, %26 : vector<8x1xf32>
      %c0_16 = arith.constant 0 : index
      %c0_17 = arith.constant 0 : index
      %28 = vector.load %arg7[%c0_16, %c0_17] : memref<8x1xf32, #tpu.memory_space<vmem>>, vector<8x1xf32>
      tpu.vector_store %arg7[%c0_16, %c0_17], %27 {strides = array<i32>} : memref<8x1xf32, #tpu.memory_space<vmem>>, vector<8x1xf32>,
      %c0_18 = arith.constant 0 : index
      %c0_19 = arith.constant 0 : index
      %c0_20 = arith.constant 0 : index
      %29 = vector.load %arg5[%c0_18, %c0_19, %c0_20] : memref<1x8x32xf32, #tpu.memory_space<vmem>>, vector<1x8x32xf32>
      %30 = vector.shape_cast %29 : vector<1x8x32xf32> to vector<8x32xf32>
      %31 = vector.broadcast %19 : vector<8x1xf32> to vector<8x32xf32>
      %32 = arith.mulf %31, %30 : vector<8x32xf32>
      %cst_21 = arith.constant dense<0.000000e+00> : vector<8x32xf32>
      %33 = tpu.matmul %22, %3, %cst_21 {dimension_numbers = #tpu.dot_dimension_numbers<[1], [0], [0], [1], [0, 0, 1, 1], [], []>, precision = #tpu.contract_precision<fp32>} : vector<8x16xf32>, vector<16x32xf32>, vector<8x32xf32> -> vector<8x32xf32>
      %34 = arith.addf %32, %33 : vector<8x32xf32>
      %c0_22 = arith.constant 0 : index
      %c0_23 = arith.constant 0 : index
      %c0_24 = arith.constant 0 : index
      %35 = vector.load %arg5[%c0_22, %c0_23, %c0_24] : memref<1x8x32xf32, #tpu.memory_space<vmem>>, vector<1x8x32xf32>
      %36 = vector.shape_cast %35 : vector<1x8x32xf32> to vector<8x32xf32>
      %37 = vector.shape_cast %34 : vector<8x32xf32> to vector<1x8x32xf32>
      tpu.vector_store %arg5[%c0_22, %c0_23, %c0_24], %37 {strides = array<i32>} : memref<1x8x32xf32, #tpu.memory_space<vmem>>, vector<1x8x32xf32>,
      %c0_25 = arith.constant 0 : index
      %c0_26 = arith.constant 0 : index
      %38 = vector.load %arg6[%c0_25, %c0_26] : memref<8x1xf32, #tpu.memory_space<vmem>>, vector<8x1xf32>
      tpu.vector_store %arg6[%c0_25, %c0_26], %17 {strides = array<i32>} : memref<8x1xf32, #tpu.memory_space<vmem>>, vector<8x1xf32>,
    } else {
    }
    %c0_i32_9 = arith.constant 0 : i32
    %13 = arith.cmpi eq, %arg2, %c0_i32_9 : i32
    %14 = arith.extui %13 : i1 to i32
    %c0_i32_10 = arith.constant 0 : i32
    %15 = arith.cmpi ne, %14, %c0_i32_10 : i32
    scf.if %15 {
      %c0_11 = arith.constant 0 : index
      %c0_12 = arith.constant 0 : index
      %c0_13 = arith.constant 0 : index
      %16 = vector.load %arg5[%c0_11, %c0_12, %c0_13] : memref<1x8x32xf32, #tpu.memory_space<vmem>>, vector<1x8x32xf32>
      %17 = vector.shape_cast %16 : vector<1x8x32xf32> to vector<8x32xf32>
      %c0_14 = arith.constant 0 : index
      %c0_15 = arith.constant 0 : index
      %18 = vector.load %arg7[%c0_14, %c0_15] : memref<8x1xf32, #tpu.memory_space<vmem>>, vector<8x1xf32>
      %19 = vector.broadcast %18 : vector<8x1xf32> to vector<8x32xf32>
      %20 = arith.divf %17, %19 : vector<8x32xf32>
      %c0_16 = arith.constant 0 : index
      %c0_17 = arith.constant 0 : index
      %c0_18 = arith.constant 0 : index
      %21 = vector.load %arg5[%c0_16, %c0_17, %c0_18] : memref<1x8x32xf32, #tpu.memory_space<vmem>>, vector<1x8x32xf32>
      %22 = vector.shape_cast %21 : vector<1x8x32xf32> to vector<8x32xf32>
      %23 = vector.shape_cast %20 : vector<8x32xf32> to vector<1x8x32xf32>
      tpu.vector_store %arg5[%c0_16, %c0_17, %c0_18], %23 {strides = array<i32>} : memref<1x8x32xf32, #tpu.memory_space<vmem>>, vector<1x8x32xf32>,
    } else {
    }
    return
  }
  func.func @transform_0(%arg0: i32, %arg1: i32, %arg2: i32) -> (i32, i32, i32) {
    %c0_i32 = arith.constant 0 : i32
    %c0_i32_0 = arith.constant 0 : i32
    return %arg0, %arg1, %c0_i32 : i32, i32, i32
  }
  func.func @transform_1(%arg0: i32, %arg1: i32, %arg2: i32) -> (i32, i32, i32) {
    %c0_i32 = arith.constant 0 : i32
    %c0_i32_0 = arith.constant 0 : i32
    return %arg0, %arg2, %c0_i32 : i32, i32, i32
  }
  func.func @transform_2(%arg0: i32, %arg1: i32, %arg2: i32) -> (i32, i32, i32) {
    %c0_i32 = arith.constant 0 : i32
    %c0_i32_0 = arith.constant 0 : i32
    return %arg0, %arg1, %c0_i32 : i32, i32, i32
  }
}

</mosaic_0001>

<bundles_post_ra>
// kernel: tpu_custom_call.1
= control target key start
LH: loop header
LB: loop body
LE: loop exit
PB: predicated region body
PF: predicated region fallthrough
CT: control target
= control target key end

     0   :  { %7 = vsyncpa [#allocation5], 0  ;;  %s2530_s0 = inlined_call_operand.hbm [shape: f32[2,8,32], index: 0, kind: input, shape index: {}]   ;;  %s2531_s1 = inlined_call_operand.hbm [shape: f32[2,16,32], index: 1, kind: input, shape index: {}]   ;;  %s2532_s2 = inlined_call_operand.hbm [shape: f32[2,8,32], index: 2, kind: output, shape index: {}]  }
   0x1   :  { %9 = vsyncpa [#allocation5 + $0x1], 0 }
   0x2   :  { %10 = vsyncpa [#allocation8], 0 }
   0x3   :  { %12 = vsyncpa [#allocation8 + $0x1], 0 }
   0x4   :  { %13 = vsyncpa [#allocation6], 0 }
   0x5   :  { %15 = vsyncpa [#allocation6 + $0x1], 0  ;;  %s2258_s9 = smov 0   ;;  %s2260_s10 = smov 0  }
   0x6   :  { %s2262_s11 = smov 0   ;;  %s2264_s12 = smov 0  }
   0x7   :  { %s2266_s13 = smov 0   ;;  %s2268_s14 = smov 0  }
   0x8 LB: > { %s1814_s15 = sadd.s32 4294967295, %s2232_s14   ;;  %s1815_s16 = sadd.s32 4294967294, %s2232_s14   ;;  %s2232_s14 = sphi %s2268_s14, %s21_s14   ;;  %s2228_s13 = sphi %s2266_s13, %s2551_s13   ;;  %s2224_s12 = sphi %s2264_s12, %s2550_s12   ;;  %s2220_s11 = sphi %s2262_s11, %s2549_s11   ;;  %s2216_s10 = sphi %s2260_s10, %s2548_s10   ;;  %s2212_s9 = sphi %s2258_s9, %s2547_s9  }
   0x9   : > { %s40_s17 = sadd.s32 1, %s2228_s13  ;;  %s49_s18 = sadd.s32 1, %s2220_s11 }
   0xa   : > { %p42_p0 = scmp.ge.s32.totalorder %s40_s17, 2  ;;  %p56_p1 = scmp.ne.s32.totalorder %s2220_s11, %s2216_s10 }
   0xb   : > { %p57_p2 = scmp.eq.s32.totalorder %s2232_s14, 0  ;;  %p62_p3 = scmp.ne.s32.totalorder %s2216_s10, %s2212_s9 }
   0xc   : > { %s2553_s17 = smov (%p42_p0, %s40_s17), 0  ;;  %p63_p5 = scmp.eq.s32.totalorder %s1814_s15, 0 }
   0xd   : > { %p2299_p4 = por %p57_p2, %p56_p1  ;;  %s44_s20 = ssub.s32 %s2228_s13, %s2553_s17 }
   0xe   : > { %p116_p6 = scmp.eq.s32.totalorder %s1814_s15, 1  ;;  %p47_p7 = scmp.eq.s32.totalorder %s44_s20, 0 }
   0xf   : > { %p2305_p8 = por %p63_p5, %p62_p3  ;;  %p122_p10 = scmp.eq.s32.totalorder %s1815_s16, 1 }
  0x10   : > { %p2309_p9 = por %p116_p6, %p56_p1  ;;  %p2024_p13 = scmp.lt.s32.totalorder %s2232_s14, 2 }
  0x11   : > { %s2536_s21 = scalar_select %p2305_p8, 1, 0 }
  0x12   : > { %s2537_s22 = scalar_select %p2309_p9, 1, 0 }
  0x13   : > { %s2314_s23 = scalar_select %p47_p7, %s2220_s11, %s49_s18  }
  0x14   : > { %p2316_p11 = por %p122_p10, %p62_p3  ;;  %s2323_s25 = sand.u32 1, %s2220_s11  }
  0x15   : > { %s1818_s26 = sshll.u32 %s2323_s25, 3  ;;  %s1819_s27 = sshll.u32 %s2228_s13, 7 }
  0x16   : > { %s2538_s24 = scalar_select %p2316_p11, 1, 0 }
  0x17   : > { %s2330_s30 = scalar_lea.hbm %s2530_s0, %s1819_s27  ;;  %s146_s3 = scalar_lea.vmem [#allocation4], %s1818_s26 }
  0x18   : > { %s154_s4 = sshll.u32 %s146_s3, 4  ;;  %p2336_p0 = pnand %p2024_p13, %p2299_p4  ;;  %s2332_s4 = int_to_ptr.vmem [resolvable:$true] %s154_s4 }
  0x19   : > { %s143_s6 = scalar_lea.sflag [#allocation5], %s2323_s25  ;;  %s2086_s7 = scalar_lea.hbm %s2330_s30, 128 }
  0x1a   : > { %p2087_p3 = scmp.ne.s32.totalorder %s2330_s30, %s2086_s7  ;;  %p2088_p5 = pneg %p2336_p0 }
  0x1b   : > { %s2091_s16 = scalar_lea.hbm %s2530_s0, 256  ;;  %p2092_p4 = scmp.lt.u32.totalorder %s2330_s30, %s2530_s0 }
  0x1c   : > { %p2089_p6 = pnand %p2088_p5, %p2087_p3  ;;  %p2093_p10 = scmp.lt.u32.totalorder %s2091_s16, %s2086_s7 }
  0x1d   : > { %p2095_p12 = scmp.lt.u32.totalorder %s2086_s7, %s2330_s30 }
  0x1e   : > { %p2090_p7 = pneg %p2089_p6  ;;  %p2094_p13 = por %p2093_p10, %p2092_p4 }
  0x20   : > { %p2096_p1 = por %p2095_p12, %p2094_p13 }
  0x22   : > { %p2097_p2 = pnand %p2096_p1, %p2090_p7 }
  0x24   : > { %2100 = shalt.err (!%p2097_p2)
}
  0x25   : > { %s2101_s20 = scalar_lea.vmem %s2332_s4, 128  ;;  %s2234_s26 = smov [#allocation4]  }
  0x26   : > { %p2102_p3 = scmp.ne.s32.totalorder %s2332_s4, %s2101_s20  ;;  %s2106_s27 = sshll.u32 %s2234_s26, 4  ;;  %s2107_s27 = int_to_ptr.vmem [resolvable:$false] %s2106_s27 }
  0x27   : > { %s2108_s28 = scalar_lea.vmem %s2107_s27, 256  ;;  %p2109_p9 = scmp.lt.s32.totalorder %s2332_s4, %s2107_s27 }
  0x28   : > { %p2104_p6 = pnand %p2102_p3, %p2088_p5  ;;  %p2110_p4 = scmp.lt.s32.totalorder %s2108_s28, %s2101_s20 }
  0x2a   : > { %p2105_p11 = pneg %p2104_p6  ;;  %p2111_p10 = por %p2110_p4, %p2109_p9 }
  0x2c   : > { %p2112_p12 = pnand %p2111_p10, %p2105_p11 }
  0x2e   : > { %2115 = shalt.err (!%p2112_p12)
}
  0x2f   : > { %2016 = dma.hbm_to_vmem [thread:$0]  (!%p2336_p0), %s2330_s30, 128, %s2332_s4, %s143_s6  }
  0x30   : > { %p2540_p1 = scmp.lt.s32.totalorder %s2232_s14, 3  ;;  %p2541_p2 = scmp.ge.s32.totalorder %s2232_s14, 1 }
  0x31   : > { %s1820_s3 = sshll.u32 %s2323_s25, 4  ;;  %s1831_s7 = sshll.u32 %s2228_s13, 8 }
  0x32   : > { %p2372_p7 = pnand %p2541_p2, %p2540_p1  ;;  %s2381_s16 = scalar_lea.hbm %s2531_s1, %s1831_s7 }
  0x33   : > { %s165_s18 = scalar_lea.vmem [#allocation7], %s1820_s3  ;;  %s162_s30 = scalar_lea.sflag [#allocation8], %s2323_s25 }
  0x34   : > { %s174_s19 = sshll.u32 %s165_s18, 4  ;;  %s2116_s4 = scalar_lea.hbm %s2381_s16, 256  ;;  %s2383_s19 = int_to_ptr.vmem [resolvable:$true] %s174_s19 }
  0x35   : > { %p2117_p9 = scmp.ne.s32.totalorder %s2381_s16, %s2116_s4  ;;  %s2121_s26 = scalar_lea.hbm %s2531_s1, 512 }
  0x36   : > { %p2122_p3 = scmp.lt.u32.totalorder %s2381_s16, %s2531_s1  ;;  %p2123_p6 = scmp.lt.u32.totalorder %s2121_s26, %s2116_s4 }
  0x37   : > { %p2119_p11 = pnand %p2117_p9, %p2088_p5  ;;  %p2125_p10 = scmp.lt.u32.totalorder %s2116_s4, %s2381_s16 }
  0x38   : > { %p2124_p4 = por %p2123_p6, %p2122_p3 }
  0x39   : > { %p2120_p13 = pneg %p2119_p11 }
  0x3a   : > { %p2126_p12 = por %p2125_p10, %p2124_p4 }
  0x3c   : > { %p2127_p1 = pnand %p2126_p12, %p2120_p13 }
  0x3e   : > { %2130 = shalt.err (!%p2127_p1)
}
  0x3f   : > { %s2131_s3 = scalar_lea.vmem %s2383_s19, 256  ;;  %s2235_s7 = smov [#allocation7]  }
  0x40   : > { %p2132_p2 = scmp.ne.s32.totalorder %s2383_s19, %s2131_s3  ;;  %s2136_s8 = sshll.u32 %s2235_s7, 4  ;;  %s2137_s8 = int_to_ptr.vmem [resolvable:$false] %s2136_s8 }
  0x41   : > { %s2138_s15 = scalar_lea.vmem %s2137_s8, 512  ;;  %p2139_p8 = scmp.lt.s32.totalorder %s2383_s19, %s2137_s8 }
  0x42   : > { %p2134_p9 = pnand %p2132_p2, %p2088_p5  ;;  %p2140_p3 = scmp.lt.s32.totalorder %s2138_s15, %s2131_s3 }
  0x44   : > { %p2135_p11 = pneg %p2134_p9  ;;  %p2141_p6 = por %p2140_p3, %p2139_p8 }
  0x46   : > { %p2142_p4 = pnand %p2141_p6, %p2135_p11 }
  0x48   : > { %2145 = shalt.err (!%p2142_p4)
}
  0x49   : > { %s2236_s18 = smov 128   ;;  %s2237_s4 = smov 8  }
  0x4a   : > { %2019 = dma.hbm_to_vmem [thread:$0]  (!%p2336_p0), %s2381_s16, 256, %s2383_s19, %s162_s30, %s2236_s18, %s2236_s18, %s2237_s4  }
  0x4b   : > { %186 = sbr.rel (%p2372_p7) target bundleno = 818 (0x332), region = 28  ;;  %s2414_s6 = sand.u32 (!%p2372_p7), 1, %s2216_s10  }
  0x4c   : > { %s1824_s20 = sshll.u32 (!%p2372_p7), %s2414_s6, 3  ;;  %s189_s26 = scalar_lea.sflag (!%p2372_p7), [#allocation5], %s2414_s6 }
  0x4d   : > { %s192_s27 = scalar_lea.vmem (!%p2372_p7), [#allocation4], %s1824_s20  ;;  %p2543_p8 = scmp.ne.s32.totalorder (!%p2372_p7), %s2536_s21, 0 }
  0x52   : > { %2199 = dma.done.wait (%p2543_p8), %s189_s26, 128  }
  0x53   : > { %2201 = vsyncadd (%p2543_p8), %s189_s26, 4294967168  ;;  %s1825_s25 = sshll.u32 %s2414_s6, 4  ;;  %s198_s5 = scalar_lea.sflag [#allocation8], %s2414_s6 }
  0x54   : > { %s201_s29 = scalar_lea.vmem [#allocation7], %s1825_s25 }
  0x55   : > { %2203 = dma.done.wait (%p2543_p8), %s198_s5, 256  }
  0x56   : > { %2205 = vsyncadd (%p2543_p8), %s198_s5, 4294967040  ;;  %v2238_v0 = vmov 0.0|0.0   ;;  %vm2239_vm0 = vmmov 0   ;;  %v2240_v1 = vmov 0.0   ;;  %vm231_vm1 = vcmask 261120   ;;  %v229_v2 = vld [vmem:[%s201_s29] sm:$0xff] }
  0x57   : > { %1955 = vmatprep.subr.bf16.mxu0 %v2238_v0  ;;  %1879 = vmatprep.mubr.msk.f32.mxu0 %vm2239_vm0, %v2240_v1  ;;  %v230_v3 = vld [vmem:[%s201_s29 + $0x8] sm:$0xff]  ;;  %v236_v5 = vsel %vm231_vm1, %v229_v2, 0  ;;  %vm700_vm2 = vcmask 130048   ;;  %v721_v33 = vand.u32 4294901760, %v229_v2  ;;  %vm711_vm3 = vcmask 7168   ;;  %s226_s21 = scalar_lea.vmem [#allocation9], %s1824_s20 }
  0x58   : > { %1952 = vmatprep.subr.bf16.mxu1 %v2238_v0  ;;  %1872 = vmatprep.mubr.msk.f32.mxu1 %vm2239_vm0, %v2240_v1  ;;  %v228_v4 = vld [vmem:[%s192_s27] sm:$0xff]  ;;  %v239_v6 = vsel %vm231_vm1, %v230_v3, 0  ;;  %v242_v8 = vand.u32 4294901760, %v236_v5  ;;  %v724_v34 = vand.u32 4294901760, %v230_v3  ;;  %v2241_v58 = vmov 0   ;;  %s1828_s16 = sshll.u32 %s2224_s12, 7 }
  0x59   : > { %v233_v7 = vsel %vm231_vm1, %v228_v4, 0  ;;  %v245_v9 = vand.u32 4294901760, %v239_v6  ;;  %v799_v36 = vsub.f32 %v229_v2, %v721_v33  ;;  %2080 = vset.pattern.permute.xlu1 %v2241_v58  ;;  %2081 = vset.pattern.permute.xlu0 %v2241_v58  ;;  %s1705_s19 = sshll.u32 %s226_s21, 4  ;;  %s2480_s3 = scalar_lea.hbm %s2532_s2, %s1828_s16  ;;  %s2482_s19 = int_to_ptr.vmem [resolvable:$true] %s1705_s19 }
  0x5a   : > { %v308_v10 = vand.u32 4294901760, %v233_v7  ;;  %v320_v11 = vsub.f32 %v236_v5, %v242_v8  ;;  %v1971_v35 = vpack.c.bf16 %v724_v34, %v721_v33  ;;  %v806_v37 = vsub.f32 %v230_v3, %v724_v34  ;;  %s1691_s7 = scalar_lea.sflag [#allocation6], %s2414_s6  ;;  %s2146_s8 = scalar_lea.vmem %s2482_s19, 128 }
  0x5b   : > { %v327_v12 = vsub.f32 %v239_v6, %v245_v9  ;;  %v1953_v14 = vpack.c.bf16 %v245_v9, %v242_v8  ;;  %v800_v38 = vand.u32 4294901760, %v799_v36  ;;  %p2147_p0 = scmp.ne.s32.totalorder %s2482_s19, %s2146_s8  ;;  %p2544_p5 = scmp.ne.s32.totalorder %s2537_s22, 0 }
  0x5c   : > { %v309_v13 = vsub.f32 %v233_v7, %v308_v10  ;;  %v321_v15 = vand.u32 4294901760, %v320_v11  ;;  %v807_v39 = vand.u32 4294901760, %v806_v37  ;;  %v1977_v45 = vpack.c.bf16 %v806_v37, %v799_v36  ;;  %s2242_s12 = smov [#allocation9]  }
  0x5d   : > { %v328_v16 = vand.u32 4294901760, %v327_v12  ;;  %1954 = vmatpush3.bf16.xpose.msra.mxu1 %v1953_v14  ;;  %v1959_v25 = vpack.c.bf16 %v327_v12, %v320_v11  ;;  %v801_v40 = vsub.f32 %v799_v36, %v800_v38  ;;  %p2148_p7 = pnand %p2147_p0, %p2544_p5  ;;  %s2150_s15 = sshll.u32 %s2242_s12, 4  ;;  %s2151_s15 = int_to_ptr.vmem [resolvable:$false] %s2150_s15 }
  0x5e   : > { %v310_v17 = vand.u32 4294901760, %v309_v13  ;;  %1970 = vmatprep.subr.bf16.mxu1 %v2238_v0  ;;  %v322_v18 = vsub.f32 %v320_v11, %v321_v15  ;;  %v808_v41 = vsub.f32 %v806_v37, %v807_v39  ;;  %v1983_v46 = vpack.c.bf16 %v807_v39, %v800_v38  ;;  %s2152_s18 = scalar_lea.vmem %s2151_s15, 256  ;;  %p2153_p10 = scmp.lt.s32.totalorder %s2482_s19, %s2151_s15 }
  0x5f   : > { %v329_v19 = vsub.f32 %v327_v12, %v328_v16  ;;  %v1965_v26 = vpack.c.bf16 %v328_v16, %v321_v15  ;;  %v802_v42 = vand.u32 4294901760, %v801_v40  ;;  %p2149_p13 = pneg %p2148_p7  ;;  %p2154_p12 = scmp.lt.s32.totalorder %s2152_s18, %s2146_s8 }
  0x60   : > { %v311_v20 = vsub.f32 %v309_v13, %v310_v17  ;;  %v323_v21 = vand.u32 4294901760, %v322_v18  ;;  %v809_v43 = vand.u32 4294901760, %v808_v41 }
  0x61   : > { %v330_v22 = vand.u32 4294901760, %v329_v19  ;;  %p2155_p1 = por %p2154_p12, %p2153_p10 }
  0x62   : > { %v312_v23 = vand.u32 4294901760, %v311_v20  ;;  %v1974_v44 = vpack.c.bf16 %v809_v43, %v802_v42 }
  0x63   : > { %v1956_v24 = vpack.c.bf16 %v330_v22, %v323_v21  ;;  %p2156_p2 = pnand %p2155_p1, %p2149_p13 }
  0x64   : > { %1873 = vmatmul.mubr.f32.vlgmr.msra.gmra.mrb[0].mxu1 %v312_v23 }
  0x65   : > { %1957 = vmatpush3.bf16.xpose.msra.mxu0 %v1956_v24  ;;  %1914 = vmatprep.mubr.msk.f32.mxu1 %vm2239_vm0, %v2240_v1 }
  0x66   : > { %1958 = vmatprep.subr.bf16.mxu0 %v2238_v0  ;;  %1972 = vmatpush3.bf16.msra.mxu1 %v1971_v35 }
  0x67   : > { %1973 = vmatprep.subr.bf16.mxu1 %v2238_v0 }
  0x6c   : > { %1880 = vmatmul.mubr.f32.vlgmr.msra.gmra.mrb[0].mxu0 %v308_v10 }
  0x6d   : > { %1960 = vmatpush3.bf16.xpose.msra.mxu0 %v1959_v25  ;;  %1886 = vmatprep.mubr.msk.f32.mxu0 %vm2239_vm0, %v2240_v1 }
  0x6e   : > { %1961 = vmatprep.subr.bf16.mxu0 %v2238_v0 }
  0x74   : > { %1887 = vmatmul.mubr.f32.vlgmr.msra.gmra.mrb[0].mxu0 %v309_v13 }
  0x75   : > { %1963 = vmatpush3.bf16.xpose.msra.mxu0 %v1953_v14  ;;  %1893 = vmatprep.mubr.msk.f32.mxu0 %vm2239_vm0, %v2240_v1 }
  0x76   : > { %1964 = vmatprep.subr.bf16.mxu0 %v2238_v0 }
  0x7c   : > { %1894 = vmatmul.mubr.f32.vlgmr.msra.gmra.mrb[0].mxu0 %v310_v17 }
  0x7d   : > { %1966 = vmatpush3.bf16.xpose.msra.mxu0 %v1965_v26  ;;  %1900 = vmatprep.mubr.msk.f32.mxu0 %vm2239_vm0, %v2240_v1 }
  0x7e   : > { %1967 = vmatprep.subr.bf16.mxu0 %v2238_v0 }
  0x84   : > { %1901 = vmatmul.mubr.f32.vlgmr.msra.gmra.mrb[0].mxu0 %v308_v10 }
  0x85   : > { %1969 = vmatpush3.bf16.xpose.msra.mxu0 %v1953_v14  ;;  %1907 = vmatprep.mubr.msk.f32.mxu0 %vm2239_vm0, %v2240_v1 }
  0x8c   : > { %1908 = vmatmul.mubr.f32.vlgmr.msra.gmra.mrb[0].mxu0 %v308_v10 }
 0x137   : > { %v314_v27 = vpop.f32.mrb[0].mxu1 }
 0x138   : > { %v1874_v28 = vpop.f32.mrb[1].mxu1 }
 0x15f   : > { %v696_v29 = vpop.f32.mrb[0].mxu0 }
 0x160   : > { %v1988_v30 = vadd.f32 %v696_v29, %v314_v27  ;;  %v1909_v31 = vpop.f32.mrb[1].mxu0 }
 0x162   : > { %v701_v32 = vsel %vm700_vm2, %v1988_v30, -inf }
 0x163   : > { %702 = vmax.xlane.f32.xlu0 %v701_v32 }
 0x1f0   : > { %v703_v47 = vpop.xlane.xlu0 %702 }
 0x1f1   : > { %v708_v48 = vsub.f32 %v1988_v30, %v703_v47 }
 0x1f3   : > { %v709_v49 = vmul.f32 1.442695, %v708_v48 }
 0x1f5   : > { %2082 = vpow2.f32 %v709_v49 }
 0x1ff   : > { %v2083_v50 = vpop.eup %2082 }
 0x200   : > { %v713_v51 = vsel %vm700_vm2, %v2083_v50, 0.0  ;;  %v718_v52 = vsel %vm700_vm2, %v2083_v50, 0 }
 0x201   : > { %714 = vadd.xlane.f32.xlu0 %v713_v51  ;;  %v787_v53 = vand.u32 4294901760, %v718_v52 }
 0x203   : > { %v788_v54 = vsub.f32 %v718_v52, %v787_v53 }
 0x205   : > { %v789_v55 = vand.u32 4294901760, %v788_v54 }
 0x207   : > { %v790_v56 = vsub.f32 %v788_v54, %v789_v55 }
 0x209   : > { %v791_v57 = vand.u32 4294901760, %v790_v56 }
 0x20b   : > { %1915 = vmatmul.mubr.f32.vlgmr.msra.gmra.mrb[2].mxu1 %v791_v57 }
 0x20c   : > { %1975 = vmatpush3.bf16.msra.mxu1 %v1974_v44  ;;  %1921 = vmatprep.mubr.msk.f32.mxu1 %vm2239_vm0, %v2240_v1 }
 0x20d   : > { %1976 = vmatprep.subr.bf16.mxu1 %v2238_v0 }
 0x213   : > { %1922 = vmatmul.mubr.f32.vlgmr.msra.gmra.mrb[2].mxu1 %v787_v53 }
 0x214   : > { %1978 = vmatpush3.bf16.msra.mxu1 %v1977_v45  ;;  %1928 = vmatprep.mubr.msk.f32.mxu1 %vm2239_vm0, %v2240_v1 }
 0x215   : > { %1979 = vmatprep.subr.bf16.mxu1 %v2238_v0 }
 0x21b   : > { %1929 = vmatmul.mubr.f32.vlgmr.msra.gmra.mrb[2].mxu1 %v788_v54 }
 0x21c   : > { %1981 = vmatpush3.bf16.msra.mxu1 %v1971_v35  ;;  %1935 = vmatprep.mubr.msk.f32.mxu1 %vm2239_vm0, %v2240_v1 }
 0x21d   : > { %1982 = vmatprep.subr.bf16.mxu1 %v2238_v0 }
 0x223   : > { %1936 = vmatmul.mubr.f32.vlgmr.msra.gmra.mrb[2].mxu1 %v789_v55 }
 0x224   : > { %1984 = vmatpush3.bf16.msra.mxu1 %v1983_v46  ;;  %1942 = vmatprep.mubr.msk.f32.mxu1 %vm2239_vm0, %v2240_v1 }
 0x225   : > { %1985 = vmatprep.subr.bf16.mxu1 %v2238_v0 }
 0x22b   : > { %1943 = vmatmul.mubr.f32.vlgmr.msra.gmra.mrb[2].mxu1 %v787_v53 }
 0x22c   : > { %1987 = vmatpush3.bf16.msra.mxu1 %v1971_v35  ;;  %1949 = vmatprep.mubr.msk.f32.mxu1 %vm2239_vm0, %v2240_v1 }
 0x233   : > { %1950 = vmatmul.mubr.f32.vlgmr.msra.gmra.mrb[2].mxu1 %v787_v53 }
 0x28e   : > { %v715_v59 = vpop.xlane.xlu0 %714 }
 0x28f   : > { %716 = vst.msk [vmem:[#allocation3] sm:$0xff] %vm711_vm3, %v715_v59 }
 0x296   : > { %v1681_v60 = vld [vmem:[#allocation3] sm:$0xff] }
 0x297   : > { %1684 = vperm.xlu1 %2080, %v1681_v60  }
 0x306   : > { %v1175_v61 = vpop.f32.mrb[2].mxu1 }
 0x307   : > { %1179 = vst.msk [vmem:[%s226_s21] sm:$0xff] %vm231_vm1, %v1175_v61  ;;  %v1951_v62 = vpop.f32.mrb[3].mxu1 }
 0x30e   : > { %v1680_v1 = vld [vmem:[%s226_s21] sm:$0xff] }
 0x316   : > { %v1685_v63 = vpop.permute.xlu1 %1684 }
 0x317   : > { %2084 = vrcp.f32 %v1685_v63 }
 0x321   : > { %v2085_v0 = vpop.eup %2084 }
 0x322   : > { %v1688_v2 = vmul.f32 %v2085_v0, %v1680_v1 }
 0x324   : > { %1689 = vst.msk [vmem:[%s226_s21] sm:$0xff] %vm231_vm1, %v1688_v2 }
 0x325   : > { %2159 = shalt.err (!%p2156_p2)
}
 0x326   : > { %s2160_s4 = scalar_lea.hbm %s2480_s3, 128  ;;  %s2164_s26 = scalar_lea.hbm %s2532_s2, 256 }
 0x327   : > { %p2161_p9 = scmp.ne.s32.totalorder %s2480_s3, %s2160_s4  ;;  %p2165_p6 = scmp.lt.u32.totalorder %s2480_s3, %s2532_s2 }
 0x328   : > { %p2166_p4 = scmp.lt.u32.totalorder %s2164_s26, %s2160_s4  ;;  %p2168_p0 = scmp.lt.u32.totalorder %s2160_s4, %s2480_s3 }
 0x329   : > { %p2162_p11 = pnand %p2161_p9, %p2544_p5 }
 0x32a   : > { %p2167_p8 = por %p2166_p4, %p2165_p6 }
 0x32b   : > { %p2163_p3 = pneg %p2162_p11 }
 0x32c   : > { %p2169_p7 = por %p2168_p0, %p2167_p8 }
 0x32e   : > { %p2170_p13 = pnand %p2169_p7, %p2163_p3 }
 0x330   : > { %2173 = shalt.err (!%p2170_p13)
}
 0x331   : > { %2011 = dma.vmem_to_hbm [thread:$0]  (%p2544_p5), %s2482_s19, 128, %s2480_s3, %s1691_s7  }
 0x332 PF: > { %s1717_s5 = sand.u32 1, %s2212_s9   ;;  %p2545_p10 = scmp.ne.s32.totalorder %s2538_s24, 0 }
 0x333   : > { %p2546_p12 = scmp.ge.s32.totalorder %s2232_s14, 2  ;;  %s1718_s29 = scalar_lea.sflag [#allocation6], %s1717_s5 }
 0x335   : > { %p2021_p1 = pnand %p2546_p12, %p2545_p10 }
 0x337   : > { %2207 = dma.done.wait (!%p2021_p1), %s1718_s29, 128  }
 0x338   : > { %2209 = vsyncadd (!%p2021_p1), %s1718_s29, 4294967168  ;;  %s21_s14 = sadd.s32 1, %s2232_s14   ;;  %s2547_s9 = smov %s2216_s10 }
 0x339   : > { %p18_p2 = scmp.ge.s32.totalorder %s21_s14, 4   ;;  %s2548_s10 = smov %s2220_s11 }
 0x33a   : > { %s2549_s11 = smov %s2314_s23  ;;  %s2550_s12 = smov %s2228_s13 }
 0x33b   : > { %s2551_s13 = smov %s2553_s17  ;;  %20 = sbr.rel (!%p18_p2) target bundleno = 8 (0x8), region = 98 }
 0x342   :  { %1723 = vsyncpa [#allocation5], 1 }
 0x343   :  { %1725 = vsyncpa [#allocation5 + $0x1], 1 }
 0x344   :  { %1726 = vsyncpa [#allocation8], 1 }
 0x345   :  { %1728 = vsyncpa [#allocation8 + $0x1], 1 }
 0x346   :  { %1729 = vsyncpa [#allocation6], 1 }
 0x347   :  { %1731 = vsyncpa [#allocation6 + $0x1], 1 }

</bundles_post_ra>
